<compile_context>
chip_gen: v5e
topology: v5e:2x2
jax: 0.10.0
libtpu: 0.0.40
codegen_flags: <defaults>
</compile_context>

<pallas_src>
import jax
import jax.numpy as jnp
import numpy as np
from jax.experimental import pallas as pl
from jax.experimental.pallas import tpu as pltpu


# ----------------------------------------------------------------------------
# Pallas kernel: fused q / (k|v) projections, relu, psi reduce, sigmoid, gate.
# Blocks are channel-on-sublane / pixel-on-lane.
# ----------------------------------------------------------------------------
def attention_block_kernel(x_ref, g_ref,
                           wqT_ref, bq_ref,
                           wkvT_ref, bkv_ref,
                           wpsi_ref, bpsi_ref,
                           out_ref):
    x = x_ref[...]                      # (F_l, tm)  bf16
    g = g_ref[...]                      # (F_g, tm)  bf16

    # q = Wq^T @ x  -> (F_int, tm), f32 accumulate on the MXU.
    q = jnp.dot(wqT_ref[...], x, preferred_element_type=jnp.float32) + bq_ref[...]

    # Fused K|V projection: one wide matmul -> (2*F_int, tm).
    kv = jnp.dot(wkvT_ref[...], g, preferred_element_type=jnp.float32) + bkv_ref[...]
    f_int = q.shape[0]
    k = kv[:f_int, :]
    v = kv[f_int:, :]

    a = jnp.maximum(q + k, 0.0)         # ReLU (VPU, f32)

    # psi projection (F_int -> 1) as multiply + sublane reduce: lane-dense (1, tm).
    psi_lin = jnp.sum(a * wpsi_ref[...], axis=0, keepdims=True) + bpsi_ref[...]
    psi = jax.nn.sigmoid(psi_lin)       # (1, tm), EUP

    out_ref[...] = (q + v * psi).astype(out_ref.dtype)


def attention_block_pallas(x_ncp, g_ncp, kparams, *, max_tm=2048):
    """x_ncp: (N, F_l, P), g_ncp: (N, F_g, P), pixels on the last axis.

    Returns (N, F_int, P) in bfloat16 (HBM-bandwidth-bound op -> bf16 I/O).
    """
    N, F_l, P = x_ncp.shape
    _, F_g, _ = g_ncp.shape
    wqT, bq = kparams["wqT"], kparams["bq"]
    wkvT, bkv = kparams["wkvT"], kparams["bkv"]
    wpsi, bpsi = kparams["wpsi"], kparams["bpsi"]
    F_int = wqT.shape[0]

    # Pixel tile: as large as possible (per-grid-step overhead ~0.35 us on a
    # mem-bound kernel).  Full pixel axis if it fits, otherwise a 128-aligned
    # tile with a masked tail block via the cdiv grid.
    if P <= max_tm:
        tm = P
    else:
        tm = max_tm - (max_tm % 128)
    grid = (N, pl.cdiv(P, tm))

    # bf16 HBM I/O for the big operands; biases stay f32 (negligible bytes).
    x_io = x_ncp.astype(jnp.bfloat16)
    g_io = g_ncp.astype(jnp.bfloat16)
    wqT_io = wqT.astype(jnp.bfloat16)
    wkvT_io = wkvT.astype(jnp.bfloat16)

    full2d = lambda shape: pl.BlockSpec(shape, lambda n, p: (0, 0))

    return pl.pallas_call(
        attention_block_kernel,
        out_shape=jax.ShapeDtypeStruct((N, F_int, P), jnp.bfloat16),
        grid=grid,
        in_specs=[
            pl.BlockSpec((None, F_l, tm), lambda n, p: (n, 0, p)),   # x tile
            pl.BlockSpec((None, F_g, tm), lambda n, p: (n, 0, p)),   # g tile
            full2d((F_int, F_l)), full2d((F_int, 1)),                # Wq^T, bq
            full2d((2 * F_int, F_g)), full2d((2 * F_int, 1)),        # [Wk|Wv]^T, bkv
            full2d((F_int, 1)), full2d((1, 1)),                      # wpsi col, bpsi
        ],
        out_specs=pl.BlockSpec((None, F_int, tm), lambda n, p: (n, 0, p)),
        compiler_params=pltpu.CompilerParams(
            dimension_semantics=("parallel", "parallel"),
            vmem_limit_bytes=32 * 1024 * 1024,
        ),
    )(x_io, g_io, wqT_io, bq, wkvT_io, bkv, wpsi, bpsi)


# ----------------------------------------------------------------------------
# Parameter construction: deterministic conv + BN params, BN folded into conv.
# ----------------------------------------------------------------------------
def _fold_conv_bn(key, c_in, c_out, eps=1e-5):
    """Conv1x1(bias=True) + BatchNorm2d(eval) folded to (W, b), y = x @ W + b."""
    k1, k2, k3, k4, k5, k6 = jax.random.split(key, 6)
    w = jax.random.normal(k1, (c_in, c_out), jnp.float32) * 0.2
    b = jax.random.normal(k2, (c_out,), jnp.float32) * 0.1
    gamma = 1.0 + 0.1 * jax.random.normal(k3, (c_out,), jnp.float32)
    beta = 0.1 * jax.random.normal(k4, (c_out,), jnp.float32)
    mean = 0.1 * jax.random.normal(k5, (c_out,), jnp.float32)
    var = jnp.abs(jax.random.normal(k6, (c_out,), jnp.float32)) + 0.5

    s = gamma / jnp.sqrt(var + eps)
    return w * s[None, :], (b - mean) * s + beta


def make_params(key, F_g, F_l, F_int):
    kq, kk, kv, kp = jax.random.split(key, 4)
    wq, bq = _fold_conv_bn(kq, F_l, F_int)
    wk, bk = _fold_conv_bn(kk, F_g, F_int)
    wv, bv = _fold_conv_bn(kv, F_g, F_int)
    wpsi, bpsi = _fold_conv_bn(kp, F_int, 1)
    return dict(wq=wq, bq=bq, wk=wk, bk=bk, wv=wv, bv=bv, wpsi=wpsi, bpsi=bpsi)


def pack_kernel_params(p):
    """Transpose / fuse the folded weights for the channels-on-sublane layout."""
    F_int = p["wq"].shape[1]
    return dict(
        wqT=p["wq"].T,                                            # (F_int, F_l)
        bq=p["bq"].reshape(F_int, 1),
        wkvT=jnp.concatenate([p["wk"], p["wv"]], axis=1).T,       # (2*F_int, F_g)
        bkv=jnp.concatenate([p["bk"], p["bv"]]).reshape(2 * F_int, 1),
        wpsi=p["wpsi"].reshape(F_int, 1),                         # column for reduce
        bpsi=p["bpsi"].reshape(1, 1),
    )


# ----------------------------------------------------------------------------
# NCHW wrapper + pure-JAX reference.
# ----------------------------------------------------------------------------
def attention_block_forward(g_nchw, x_nchw, params):
    N, F_g, H, W = g_nchw.shape
    _, F_l, _, _ = x_nchw.shape
    F_int = params["wq"].shape[1]
    kparams = pack_kernel_params(params)
    # NCHW -> (N, C, H*W): free reshape, no transpose / extra HBM pass.
    g3 = g_nchw.reshape(N, F_g, H * W)
    x3 = x_nchw.reshape(N, F_l, H * W)
    out3 = attention_block_pallas(x3, g3, kparams)
    return out3.reshape(N, F_int, H, W)


def attention_block_reference(g_nchw, x_nchw, params):
    bcast = lambda b: b[None, :, None, None]
    q = jnp.einsum('nchw,cf->nfhw', x_nchw, params["wq"]) + bcast(params["bq"])
    k = jnp.einsum('nchw,cf->nfhw', g_nchw, params["wk"]) + bcast(params["bk"])
    v = jnp.einsum('nchw,cf->nfhw', g_nchw, params["wv"]) + bcast(params["bv"])
    a = jnp.maximum(q + k, 0.0)
    psi = jax.nn.sigmoid(jnp.einsum('nchw,cf->nfhw', a, params["wpsi"])
                         + bcast(params["bpsi"]))
    return q + v * psi


if __name__ == "__main__":
    # Small shapes consistent with the module: g is NCHW with F_g channels,
    # x is NCHW with F_l channels, same spatial size.
    N, H, W = 2, 16, 16
    F_g, F_l, F_int = 4, 4, 8

    root = jax.random.PRNGKey(0)
    kparam, kg, kx = jax.random.split(root, 3)

    params = make_params(kparam, F_g, F_l, F_int)
    g = jax.random.normal(kg, (N, F_g, H, W), jnp.float32)
    x = jax.random.normal(kx, (N, F_l, H, W), jnp.float32)

    # The kernel uses bf16 HBM I/O; pre-round data/weights to bf16-representable
    # values so the f32 reference and the kernel see identical inputs and the
    # check isolates kernel math (f32 accumulate) + bf16 output rounding.
    bf16_exact = lambda a: a.astype(jnp.bfloat16).astype(jnp.float32)
    params = {k_: bf16_exact(v_) for k_, v_ in params.items()}
    g = bf16_exact(g)
    x = bf16_exact(x)

    out = attention_block_forward(g, x, params)
    out = jax.block_until_ready(out).astype(jnp.float32)

    ref = jax.block_until_ready(attention_block_reference(g, x, params))
    np.testing.assert_allclose(np.asarray(out), np.asarray(ref),
                               rtol=2e-2, atol=2e-2)

    print("KERNEL_OK")
</pallas_src>

<mosaic_0001>
module attributes {stable_mosaic.version = 11 : i64} {
  func.func @attention_block_kernel(%arg0: i32, %arg1: i32, %arg2: memref<1x4x256xbf16, #tpu.memory_space<vmem>>, %arg3: memref<1x4x256xbf16, #tpu.memory_space<vmem>>, %arg4: memref<8x4xbf16, #tpu.memory_space<vmem>>, %arg5: memref<8x1xf32, #tpu.memory_space<vmem>>, %arg6: memref<16x4xbf16, #tpu.memory_space<vmem>>, %arg7: memref<16x1xf32, #tpu.memory_space<vmem>>, %arg8: memref<8x1xf32, #tpu.memory_space<vmem>>, %arg9: memref<1x1xf32, #tpu.memory_space<vmem>>, %arg10: memref<1x8x256xbf16, #tpu.memory_space<vmem>>) attributes {dimension_semantics = [#tpu.dimension_semantics<parallel>, #tpu.dimension_semantics<parallel>], iteration_bounds = array<i64: 2, 1>, scalar_prefetch = 0 : i64, scratch_operands = 0 : i64, tpu.core_type = #tpu.core_type<tc>, window_params = [{transform_indices = @transform_0, window_bounds = array<i64: 1, 4, 256>}, {transform_indices = @transform_1, window_bounds = array<i64: 1, 4, 256>}, {pipeline_mode = #tpu.pipeline_mode<synchronous>, transform_indices = @transform_2, window_bounds = array<i64: 8, 4>}, {pipeline_mode = #tpu.pipeline_mode<synchronous>, transform_indices = @transform_3, window_bounds = array<i64: 8, 1>}, {pipeline_mode = #tpu.pipeline_mode<synchronous>, transform_indices = @transform_4, window_bounds = array<i64: 16, 4>}, {pipeline_mode = #tpu.pipeline_mode<synchronous>, transform_indices = @transform_5, window_bounds = array<i64: 16, 1>}, {pipeline_mode = #tpu.pipeline_mode<synchronous>, transform_indices = @transform_6, window_bounds = array<i64: 8, 1>}, {pipeline_mode = #tpu.pipeline_mode<synchronous>, transform_indices = @transform_7, window_bounds = array<i64: 1, 1>}, {transform_indices = @transform_8, window_bounds = array<i64: 1, 8, 256>}]} {
    %c0 = arith.constant 0 : index
    %c0_0 = arith.constant 0 : index
    %c0_1 = arith.constant 0 : index
    %0 = vector.load %arg2[%c0, %c0_0, %c0_1] : memref<1x4x256xbf16, #tpu.memory_space<vmem>>, vector<1x4x256xbf16>
    %1 = vector.shape_cast %0 : vector<1x4x256xbf16> to vector<4x256xbf16>
    %c0_2 = arith.constant 0 : index
    %c0_3 = arith.constant 0 : index
    %c0_4 = arith.constant 0 : index
    %2 = vector.load %arg3[%c0_2, %c0_3, %c0_4] : memref<1x4x256xbf16, #tpu.memory_space<vmem>>, vector<1x4x256xbf16>
    %3 = vector.shape_cast %2 : vector<1x4x256xbf16> to vector<4x256xbf16>
    %c0_5 = arith.constant 0 : index
    %c0_6 = arith.constant 0 : index
    %4 = vector.load %arg4[%c0_5, %c0_6] : memref<8x4xbf16, #tpu.memory_space<vmem>>, vector<8x4xbf16>
    %cst = arith.constant dense<0.000000e+00> : vector<8x256xf32>
    %5 = tpu.matmul %4, %1, %cst {dimension_numbers = #tpu.dot_dimension_numbers<[1], [0], [0], [1], [0, 0, 1, 1], [], []>} : vector<8x4xbf16>, vector<4x256xbf16>, vector<8x256xf32> -> vector<8x256xf32>
    %c0_7 = arith.constant 0 : index
    %c0_8 = arith.constant 0 : index
    %6 = vector.load %arg5[%c0_7, %c0_8] : memref<8x1xf32, #tpu.memory_space<vmem>>, vector<8x1xf32>
    %7 = vector.broadcast %6 : vector<8x1xf32> to vector<8x256xf32>
    %8 = arith.addf %5, %7 : vector<8x256xf32>
    %c0_9 = arith.constant 0 : index
    %c0_10 = arith.constant 0 : index
    %9 = vector.load %arg6[%c0_9, %c0_10] : memref<16x4xbf16, #tpu.memory_space<vmem>>, vector<16x4xbf16>
    %cst_11 = arith.constant dense<0.000000e+00> : vector<16x256xf32>
    %10 = tpu.matmul %9, %3, %cst_11 {dimension_numbers = #tpu.dot_dimension_numbers<[1], [0], [0], [1], [0, 0, 1, 1], [], []>} : vector<16x4xbf16>, vector<4x256xbf16>, vector<16x256xf32> -> vector<16x256xf32>
    %c0_12 = arith.constant 0 : index
    %c0_13 = arith.constant 0 : index
    %11 = vector.load %arg7[%c0_12, %c0_13] : memref<16x1xf32, #tpu.memory_space<vmem>>, vector<16x1xf32>
    %12 = vector.broadcast %11 : vector<16x1xf32> to vector<16x256xf32>
    %13 = arith.addf %10, %12 : vector<16x256xf32>
    %14 = vector.extract_strided_slice %13 {offsets = [0, 0], sizes = [8, 256], strides = [1, 1]} : vector<16x256xf32> to vector<8x256xf32>
    %15 = vector.extract_strided_slice %13 {offsets = [8, 0], sizes = [8, 256], strides = [1, 1]} : vector<16x256xf32> to vector<8x256xf32>
    %16 = arith.addf %8, %14 : vector<8x256xf32>
    %cst_14 = arith.constant 0.000000e+00 : f32
    %17 = vector.broadcast %cst_14 : f32 to vector<8x256xf32>
    %18 = arith.maximumf %16, %17 : vector<8x256xf32>
    %c0_15 = arith.constant 0 : index
    %c0_16 = arith.constant 0 : index
    %19 = vector.load %arg8[%c0_15, %c0_16] : memref<8x1xf32, #tpu.memory_space<vmem>>, vector<8x1xf32>
    %20 = vector.broadcast %19 : vector<8x1xf32> to vector<8x256xf32>
    %21 = arith.mulf %18, %20 : vector<8x256xf32>
    %cst_17 = arith.constant dense<0.000000e+00> : vector<256xf32>
    %22 = vector.multi_reduction <add>, %21, %cst_17 [0] : vector<8x256xf32> to vector<256xf32>
    %23 = vector.shape_cast %22 : vector<256xf32> to vector<1x256xf32>
    %c0_18 = arith.constant 0 : index
    %c0_19 = arith.constant 0 : index
    %24 = vector.load %arg9[%c0_18, %c0_19] : memref<1x1xf32, #tpu.memory_space<vmem>>, vector<1x1xf32>
    %25 = vector.broadcast %24 : vector<1x1xf32> to vector<1x256xf32>
    %26 = arith.addf %23, %25 : vector<1x256xf32>
    %27 = arith.negf %26 : vector<1x256xf32>
    %28 = math.exp %27 : vector<1x256xf32>
    %cst_20 = arith.constant 1.000000e+00 : f32
    %29 = vector.broadcast %cst_20 : f32 to vector<1x256xf32>
    %30 = arith.addf %29, %28 : vector<1x256xf32>
    %31 = arith.divf %29, %30 : vector<1x256xf32>
    %32 = vector.broadcast %31 : vector<1x256xf32> to vector<8x256xf32>
    %33 = arith.mulf %15, %32 : vector<8x256xf32>
    %34 = arith.addf %8, %33 : vector<8x256xf32>
    %35 = arith.truncf %34 : vector<8x256xf32> to vector<8x256xbf16>
    %c0_21 = arith.constant 0 : index
    %c0_22 = arith.constant 0 : index
    %c0_23 = arith.constant 0 : index
    %36 = vector.load %arg10[%c0_21, %c0_22, %c0_23] : memref<1x8x256xbf16, #tpu.memory_space<vmem>>, vector<1x8x256xbf16>
    %37 = vector.shape_cast %36 : vector<1x8x256xbf16> to vector<8x256xbf16>
    %38 = vector.shape_cast %35 : vector<8x256xbf16> to vector<1x8x256xbf16>
    tpu.vector_store %arg10[%c0_21, %c0_22, %c0_23], %38 {strides = array<i32>} : memref<1x8x256xbf16, #tpu.memory_space<vmem>>, vector<1x8x256xbf16>,
    return
  }
  func.func @transform_0(%arg0: i32, %arg1: i32) -> (i32, i32, i32) {
    %c0_i32 = arith.constant 0 : i32
    %c0_i32_0 = arith.constant 0 : i32
    return %arg0, %c0_i32, %arg1 : i32, i32, i32
  }
  func.func @transform_1(%arg0: i32, %arg1: i32) -> (i32, i32, i32) {
    %c0_i32 = arith.constant 0 : i32
    %c0_i32_0 = arith.constant 0 : i32
    return %arg0, %c0_i32, %arg1 : i32, i32, i32
  }
  func.func @transform_2(%arg0: i32, %arg1: i32) -> (i32, i32) {
    %c0_i32 = arith.constant 0 : i32
    %c0_i32_0 = arith.constant 0 : i32
    %c0_i32_1 = arith.constant 0 : i32
    return %c0_i32, %c0_i32_0 : i32, i32
  }
  func.func @transform_3(%arg0: i32, %arg1: i32) -> (i32, i32) {
    %c0_i32 = arith.constant 0 : i32
    %c0_i32_0 = arith.constant 0 : i32
    %c0_i32_1 = arith.constant 0 : i32
    return %c0_i32, %c0_i32_0 : i32, i32
  }
  func.func @transform_4(%arg0: i32, %arg1: i32) -> (i32, i32) {
    %c0_i32 = arith.constant 0 : i32
    %c0_i32_0 = arith.constant 0 : i32
    %c0_i32_1 = arith.constant 0 : i32
    return %c0_i32, %c0_i32_0 : i32, i32
  }
  func.func @transform_5(%arg0: i32, %arg1: i32) -> (i32, i32) {
    %c0_i32 = arith.constant 0 : i32
    %c0_i32_0 = arith.constant 0 : i32
    %c0_i32_1 = arith.constant 0 : i32
    return %c0_i32, %c0_i32_0 : i32, i32
  }
  func.func @transform_6(%arg0: i32, %arg1: i32) -> (i32, i32) {
    %c0_i32 = arith.constant 0 : i32
    %c0_i32_0 = arith.constant 0 : i32
    %c0_i32_1 = arith.constant 0 : i32
    return %c0_i32, %c0_i32_0 : i32, i32
  }
  func.func @transform_7(%arg0: i32, %arg1: i32) -> (i32, i32) {
    %c0_i32 = arith.constant 0 : i32
    %c0_i32_0 = arith.constant 0 : i32
    %c0_i32_1 = arith.constant 0 : i32
    return %c0_i32, %c0_i32_0 : i32, i32
  }
  func.func @transform_8(%arg0: i32, %arg1: i32) -> (i32, i32, i32) {
    %c0_i32 = arith.constant 0 : i32
    %c0_i32_0 = arith.constant 0 : i32
    return %arg0, %c0_i32, %arg1 : i32, i32, i32
  }
}

</mosaic_0001>

<bundles_post_ra>
// kernel: tpu_custom_call.1
= control target key start
LH: loop header
LB: loop body
LE: loop exit
PB: predicated region body
PF: predicated region fallthrough
CT: control target
= control target key end

     0   :  { %s1029_s0 = inlined_call_operand.vmem [shape: bf16[2,4,256], index: 0, kind: input, shape index: {}]   ;;  %s1030_s1 = inlined_call_operand.vmem [shape: bf16[2,4,256], index: 1, kind: input, shape index: {}]   ;;  %s1031_s2 = inlined_call_operand.vmem [shape: bf16[8,4], index: 2, kind: input, shape index: {}]   ;;  %s1032_s3 = inlined_call_operand.vmem [shape: f32[8,1], index: 3, kind: input, shape index: {}]   ;;  %s1033_s4 = inlined_call_operand.vmem [shape: bf16[16,4], index: 4, kind: input, shape index: {}]   ;;  %s1034_s5 = inlined_call_operand.vmem [shape: f32[16,1], index: 5, kind: input, shape index: {}]   ;;  %s1035_s6 = inlined_call_operand.vmem [shape: f32[8,1], index: 6, kind: input, shape index: {}]   ;;  %s1036_s7 = inlined_call_operand.<no memory space> [shape: f32[1,1], index: 7, kind: input, shape index: {}]   ;;  %s1037_s8 = inlined_call_operand.hbm [shape: bf16[2,8,256], index: 8, kind: output, shape index: {}]  }
   0x1   :  { %v13_v0 = vstv %s1036_s7 }
   0x2   :  { %14 = vst [vmem:[#allocation2] sm:$0x1] %v13_v0 }
   0x3   :  { %15 = vsyncpa [#allocation4], 0 }
   0x4   :  { %17 = vsyncpa [#allocation4 + $0x1], 0  ;;  %s895_s29 = smov 0   ;;  %s897_s30 = smov 0  }
   0x5   :  { %s899_s9 = smov 0   ;;  %s901_s10 = smov 0  }
   0x6   :  { %s903_s11 = smov 0   ;;  %s905_s12 = smov 0  }
   0x7 LB: > { %s670_s7 = sadd.s32 4294967295, %s844_s12   ;;  %s671_s13 = sadd.s32 4294967294, %s844_s12   ;;  %s844_s12 = sphi %s905_s12, %s23_s12   ;;  %s840_s11 = sphi %s903_s11, %s1044_s11   ;;  %s836_s10 = sphi %s901_s10, %s1043_s10   ;;  %s832_s9 = sphi %s899_s9, %s1042_s9   ;;  %s828_s30 = sphi %s897_s30, %s1041_s30   ;;  %s824_s29 = sphi %s895_s29, %s1040_s29  }
   0x8   : > { %s35_s14 = sadd.s32 1, %s840_s11  ;;  %s226_s15 = sadd.s32 1, %s832_s9 }
   0x9   : > { %p37_p0 = scmp.ge.s32.totalorder %s35_s14, 2  ;;  %p236_p1 = scmp.ne.s32.totalorder %s832_s9, %s828_s30 }
   0xa   : > { %p237_p2 = scmp.eq.s32.totalorder %s670_s7, 1  ;;  %p242_p3 = scmp.ne.s32.totalorder %s828_s30, %s824_s29 }
   0xb   : > { %s1046_s14 = smov (%p37_p0, %s35_s14), 0  ;;  %p243_p5 = scmp.eq.s32.totalorder %s671_s13, 1 }
   0xc   : > { %p935_p4 = por %p237_p2, %p236_p1  ;;  %s221_s17 = ssub.s32 %s840_s11, %s1046_s14 }
   0xd   : > { %p674_p6 = scmp.ge.s32.totalorder %s844_s12, 1  ;;  %p224_p7 = scmp.eq.s32.totalorder %s221_s17, 0 }
   0xe   : > { %p942_p8 = por %p243_p5, %p242_p3  ;;  %p305_p9 = scmp.lt.s32.totalorder %s844_s12, 3 }
   0xf   : > { %s948_s19 = scalar_select %p224_p7, %s832_s9, %s226_s15  }
  0x10   : > { %p306_p10 = pnand %p674_p6, %p305_p9 }
  0x11   : > { %p353_p11 = scmp.lt.s32.totalorder (!%p306_p10), %s836_s10, 1  ;;  %s698_s7 = sshll.u32 (!%p306_p10), %s836_s10, 3 }
  0x12   : > { %309 = sbr.rel (%p306_p10) target bundleno = 240 (0xf0), region = 52  ;;  %s571_s17 = scalar_lea.hbm (!%p306_p10), %s1037_s8, %s698_s7 }
  0x13   : > { %s575_s21 = sshll.u32 (!%p306_p10), %s571_s17, 4  ;;  %s576_s21 = int_to_ptr.hbm [resolvable:$true] %s575_s21 }
  0x17   : > { %v846_v1 = vmov 0   ;;  %v377_v2 = vld [vmem:[%s1032_s3] sm:$0xff]  ;;  %s354_s22 = scalar_select %p353_p11, %s836_s10, 1  ;;  %v425_v4 = vld [vmem:[%s1034_s5 + $0x8] sm:$0xff]  ;;  %vm391_vm0 = vcmask 1041408   ;;  %vm387_vm1 = vcmask 31744  }
  0x18   : > { %755 = vset.pattern.permute.xlu0 %v846_v1  ;;  %756 = vset.pattern.permute.xlu1 %v846_v1  ;;  %v484_v3 = vld [vmem:[%s1035_s6] sm:$0xff]  ;;  %v504_v7 = vld [vmem:[#allocation2] sm:$0x1] }
  0x19   : > { %380 = vperm.xlu0 %755, %v377_v2   ;;  %757 = vset.pattern.permute.xlu2 %v846_v1  ;;  %s695_s27 = sshll.u32 %s354_s22, 2  ;;  %v424_v6 = vld [vmem:[%s1034_s5] sm:$0xff]  ;;  %s780_s22 = sshra.s32 %s576_s21, 4  ;;  %s781_s22 = int_to_ptr.hbm [resolvable:$true] %s780_s22 }
  0x1a   : > { %487 = vperm.xlu1 %756, %v484_v3   ;;  %433 = vperm.xlu2 %757, %v425_v4   ;;  %s360_s13 = scalar_lea.vmem %s1029_s0, %s695_s27  ;;  %s370_s23 = scalar_lea.vmem %s1030_s1, %s695_s27  ;;  %v376_v13 = vld [vmem:[%s1031_s2] sm:$0xf] }
  0x1b   : > { %v374_v5 = vld [vmem:[%s360_s13] sm:$0xf]  ;;  %s349_s27 = sand.u32 1, %s828_s30   ;;  %s782_s24 = scalar_lea.hbm %s781_s22, 8 }
  0x1c   : > { %384 = vst [vmem:[#allocation1] ss:$4 sm:$0xff] %v374_v5  ;;  %v375_v8 = vld [vmem:[%s370_s23] sm:$0xf]  ;;  %s675_s28 = sshll.u32 %s349_s27, 3  ;;  %s558_s23 = scalar_lea.sflag [#allocation4], %s349_s27 }
  0x1d   : > { %v697_v18 = vld [vmem:[%s1033_s4] sm:$0xff]  ;;  %s351_s10 = scalar_lea.vmem [#allocation3], %s675_s28  ;;  %p783_p12 = scmp.ne.s32.totalorder %s781_s22, %s782_s24 }
  0x1e   : > { %s573_s20 = sshll.u32 %s351_s10, 4  ;;  %s786_s28 = scalar_lea.hbm %s1037_s8, 16  ;;  %s574_s20 = int_to_ptr.vmem [resolvable:$true] %s573_s20 }
  0x1f   : > { %p784_p13 = pnand %p783_p12, %p935_p4  ;;  %p787_p1 = scmp.lt.s32.totalorder %s781_s22, %s1037_s8 }
  0x20   : > { %p788_p2 = scmp.lt.s32.totalorder %s786_s28, %s782_s24 }
  0x21   : > { %428 = vperm.xlu0 %755, %v424_v6   ;;  %p785_p0 = pneg %p784_p13 }
  0x22   : > { %507 = vperm.xlu1 %756, %v504_v7   ;;  %p789_p3 = por %p788_p2, %p787_p1 }
  0x23   : > { %v385_v9 = vld.sshfl [vmem:[#allocation1] sm:$0xff pattern:$0x73625140]  ;;  %v386_v10 = vld.sshfl [vmem:[#allocation1 + $0x8] sm:$0xff pattern:$0x73625140] }
  0x24   : > { %v392_v11 = vsel %vm391_vm0, %v385_v9, 0  ;;  %v394_v12 = vsel %vm391_vm0, %v386_v10, 0  ;;  %442 = vst [vmem:[#allocation1] ss:$4 sm:$0xff] %v375_v8  ;;  %p790_p5 = pnand %p789_p3, %p785_p0 }
  0x25   : > { %403 = vmatpush.bf16.msra.mxu0 %v392_v11  ;;  %416 = vmatpush.bf16.msra.mxu1 %v394_v12 }
  0x28   : > { %680 = vmatmul.msk.bf16.vlgmr.msra.gmra.mxu0 %vm387_vm1, %v376_v13  ;;  %681 = vmatmul.msk.bf16.vlgmr.msra.gmra.mxu1 %vm387_vm1, %v376_v13 }
  0x2b   : > { %v443_v14 = vld.sshfl [vmem:[#allocation1] sm:$0xff pattern:$0x73625140]  ;;  %v444_v15 = vld.sshfl [vmem:[#allocation1 + $0x8] sm:$0xff pattern:$0x73625140] }
  0x2c   : > { %v448_v16 = vsel %vm391_vm0, %v443_v14, 0  ;;  %v450_v17 = vsel %vm391_vm0, %v444_v15, 0 }
  0x2d   : > { %459 = vmatpush.bf16.msra.mxu2 %v448_v16  ;;  %473 = vmatpush.bf16.msra.mxu3 %v450_v17 }
  0x30   : > { %686 = vmatmul.msk.bf16.vlgmr.msra.gmra.mxu2 %vm387_vm1, %v697_v18  ;;  %687 = vmatmul.msk.bf16.vlgmr.msra.gmra.mxu3 %vm387_vm1, %v697_v18 }
  0x74   : > { %v434_v6 = vpop.permute.xlu2 %433 }
  0x8b   : > { %v381_v21 = vpop.permute.xlu0 %380 }
  0x8c   : > { %v488_v35 = vpop.permute.xlu1 %487 }
  0x93   : > { %v429_v24 = vpop.permute.xlu0 %428 }
  0x94   : > { %v508_v46 = vpop.permute.xlu1 %507 }
  0x95   : > { %v510_v51 = vperm.slane %v508_v46, 0 }
  0xa5   : > { %v405_v19 = vpop.f32.mrf.mxu0  ;;  %v418_v20 = vpop.f32.mrf.mxu1 }
  0xa6   : > { %v980_v27 = vadd.f32 %v405_v19, %v381_v21  ;;  %v982_v28 = vadd.f32 %v418_v20, %v381_v21 }
  0xad   : > { %v407_v22 = vpop.f32.mrf.mxu0  ;;  %v420_v23 = vpop.f32.mrf.mxu1 }
  0xb3   : > { %v461_v25 = vpop.f32.mrf.mxu2  ;;  %v475_v26 = vpop.f32.mrf.mxu3 }
  0xb4   : > { %v462_v29 = vadd.f32 %v461_v25, %v429_v24  ;;  %v476_v30 = vadd.f32 %v475_v26, %v429_v24 }
  0xb6   : > { %v480_v31 = vadd.f32 %v462_v29, %v980_v27  ;;  %v481_v32 = vadd.f32 %v476_v30, %v982_v28 }
  0xb8   : > { %v482_v33 = vmax.f32 %v480_v31, 0.0  ;;  %v483_v34 = vmax.f32 %v481_v32, 0.0 }
  0xba   : > { %v490_v36 = vmul.f32 %v488_v35, %v482_v33  ;;  %v491_v37 = vmul.f32 %v488_v35, %v483_v34 }
  0xbb   : > { %v463_v7 = vpop.f32.mrf.mxu2  ;;  %v477_v11 = vpop.f32.mrf.mxu3 }
  0xbc   : > { %v492_v38 = vrot.slane %v490_v36, 4  ;;  %v498_v39 = vrot.slane %v491_v37, 4  ;;  %v464_v14 = vadd.f32 %v463_v7, %v434_v6  ;;  %v478_v18 = vadd.f32 %v477_v11, %v434_v6 }
  0xbe   : > { %v493_v40 = vadd.f32 %v492_v38, %v490_v36  ;;  %v499_v41 = vadd.f32 %v498_v39, %v491_v37 }
  0xc0   : > { %v494_v42 = vrot.slane %v493_v40, 2  ;;  %v500_v43 = vrot.slane %v499_v41, 2 }
  0xc2   : > { %v495_v44 = vadd.f32 %v494_v42, %v493_v40  ;;  %v501_v45 = vadd.f32 %v500_v43, %v499_v41 }
  0xc4   : > { %v496_v47 = vrot.slane %v495_v44, 1  ;;  %v502_v48 = vrot.slane %v501_v45, 1 }
  0xc6   : > { %v497_v49 = vadd.f32 %v496_v47, %v495_v44  ;;  %v503_v50 = vadd.f32 %v502_v48, %v501_v45 }
  0xc8   : > { %v511_v52 = vadd.f32 %v510_v51, %v497_v49  ;;  %v512_v53 = vadd.f32 %v510_v51, %v503_v50 }
  0xca   : > { %v688_v54 = vmul.f32 -1.442695, %v511_v52  ;;  %v689_v55 = vmul.f32 -1.442695, %v512_v53 }
  0xcc   : > { %758 = vpow2.f32 %v688_v54 }
  0xcd   : > { %760 = vpow2.f32 %v689_v55 }
  0xd2   : > { %v759_v56 = vpop.eup %758 }
  0xd3   : > { %v761_v57 = vpop.eup %760  ;;  %v519_v58 = vadd.f32 1.0, %v759_v56 }
  0xd4   : > { %v520_v59 = vadd.f32 1.0, %v761_v57 }
  0xd5   : > { %762 = vrcp.f32 %v519_v58  ;;  %v532_v1 = vand.u32 2147483648, %v519_v58  ;;  %v530_v4 = vand.u32 2147483647, %v519_v58  ;;  %vm526_vm4 = vweird.f32 %v519_v58 }
  0xd6   : > { %764 = vrcp.f32 %v520_v59  ;;  %v547_v5 = vand.u32 2147483648, %v520_v59  ;;  %v545_v9 = vand.u32 2147483647, %v520_v59  ;;  %vm541_vm6 = vweird.f32 %v520_v59 }
  0xd7   : > { %v533_v12 = vor.u32 1.1754944e-38, %v532_v1  ;;  %vm531_vm7 = vcmp.eq.f32.partialorder %v530_v4, 8.507059e+37 }
  0xd8   : > { %v548_v16 = vor.u32 1.1754944e-38, %v547_v5  ;;  %vm546_vm9 = vcmp.eq.f32.partialorder %v545_v9, 8.507059e+37 }
  0xdb   : > { %v763_v60 = vpop.eup %762 }
  0xdc   : > { %v765_v61 = vpop.eup %764  ;;  %v522_v62 = vmul.f32 %v763_v60, %v519_v58  ;;  %vm527_vm2 = vweird.f32 %v763_v60 }
  0xdd   : > { %v537_v63 = vmul.f32 %v765_v61, %v520_v59  ;;  %vm542_vm3 = vweird.f32 %v765_v61  ;;  %vm528_vm5 = vmor %vm526_vm4, %vm527_vm2 }
  0xde   : > { %v523_v0 = vsub.f32 1.0, %v522_v62  ;;  %vm543_vm8 = vmor %vm541_vm6, %vm542_vm3 }
  0xdf   : > { %v538_v2 = vsub.f32 1.0, %v537_v63 }
  0xe0   : > { %v524_v3 = vmul.f32 %v763_v60, %v523_v0 }
  0xe1   : > { %v539_v8 = vmul.f32 %v765_v61, %v538_v2 }
  0xe2   : > { %v525_v10 = vadd.f32 %v763_v60, %v524_v3 }
  0xe3   : > { %v540_v13 = vadd.f32 %v765_v61, %v539_v8 }
  0xe4   : > { %v529_v15 = vsel %vm528_vm5, %v763_v60, %v525_v10 }
  0xe5   : > { %v534_v17 = vsel %vm531_vm7, %v533_v12, %v529_v15  ;;  %v544_v19 = vsel %vm543_vm8, %v765_v61, %v540_v13 }
  0xe6   : > { %v551_v20 = vmul.f32 %v534_v17, %v464_v14  ;;  %v549_v21 = vsel %vm546_vm9, %v548_v16, %v544_v19 }
  0xe7   : > { %v552_v22 = vmul.f32 %v549_v21, %v478_v18 }
  0xe8   : > { %v553_v23 = vadd.f32 %v551_v20, %v980_v27 }
  0xe9   : > { %v554_v24 = vadd.f32 %v552_v22, %v982_v28 }
  0xeb   : > { %v555_v25 = vpack.c.bf16 %v554_v24, %v553_v23 }
  0xed   : > { %556 = vst [vmem:[%s351_s10] sm:$0xff] %v555_v25 }
  0xee   : > { %793 = shalt.err (!%p790_p5)
}
  0xef   : > { %699 = dma.vmem_to_hbm [thread:$0]  (%p935_p4), %s574_s20, 128, %s576_s21, %s558_s23  }
  0xf0 PF: > { %p705_p6 = scmp.ge.s32.totalorder %s844_s12, 2  ;;  %s587_s27 = sand.u32 1, %s824_s29  }
  0xf1   : > { %s588_s15 = scalar_lea.sflag [#allocation4], %s587_s27 }
  0xf2   : > { %p702_p7 = pnand %p705_p6, %p942_p8 }
  0xf4   : > { %p703_p9 = pneg %p702_p7 }
  0xf6   : > { %819 = dma.done.wait (%p703_p9), %s588_s15, 128  }
  0xf7   : > { %821 = vsyncadd (%p703_p9), %s588_s15, 4294967168  ;;  %s23_s12 = sadd.s32 1, %s844_s12   ;;  %s1040_s29 = smov %s828_s30 }
  0xf8   : > { %p20_p10 = scmp.ge.s32.totalorder %s23_s12, 4   ;;  %s1041_s30 = smov %s832_s9 }
  0xf9   : > { %s1042_s9 = smov %s948_s19  ;;  %s1043_s10 = smov %s840_s11 }
  0xfa   : > { %s1044_s11 = smov %s1046_s14  ;;  %22 = sbr.rel (!%p20_p10) target bundleno = 7 (0x7), region = 90 }
  0xff   :  { %594 = vsyncpa [#allocation4], 1 }
 0x100   :  { %596 = vsyncpa [#allocation4 + $0x1], 1 }

</bundles_post_ra>
